<compile_context>
chip_gen: v5e
topology: v5e:2x2
jax: 0.10.0
libtpu: 0.0.40
codegen_flags: <defaults>
</compile_context>

<pallas_src>
import jax
import jax.numpy as jnp
from jax.experimental import pallas as pl
from jax.experimental.pallas import tpu as pltpu

MAX_TILE_B = 512    # batch-tile cap (block-size sweep sweet spot; ~5 MiB working set)
HIDDEN2_PAD = 128   # pad layer-2 width 64 -> 128: lane-dense h2 and K=128 for layer 3
OUT_PAD = 128       # pad 10 logits to 128 lanes -> unmasked (lane-dense) vst on output


def _round_up(n, m):
    return ((n + m - 1) // m) * m


def _choose_tile_b(batch):
    """Batch tile: multiple of 8 (sublane granule; 128 once the batch is big enough),
    capped at MAX_TILE_B, and small enough that the grid has >= 2 steps whenever the
    batch allows it, so v7x can shard batch tiles across both TensorCores."""
    granule = 128 if batch >= 256 else 8
    half = _round_up(max(batch // 2, granule), granule)
    return min(MAX_TILE_B, half)


def mlp_kernel(x_ref, w1_ref, b1_ref, w2_ref, b2_ref, w3_ref, b3_ref, o_ref):
    # In-kernel f32 -> bf16 downcast of activations (hides under the MXU; avoids a
    # separate full-HBM cast pass in the wrapper on this memory-bound kernel).
    x = x_ref[...].astype(jnp.bfloat16)
    # Layer 1: (TILE_B,784) @ (784,256) on the MXU, f32 accumulate; f32 bias+ReLU (VPU).
    h1 = jnp.dot(x, w1_ref[...], preferred_element_type=jnp.float32)
    h1 = jnp.maximum(h1 + b1_ref[...], 0.0).astype(jnp.bfloat16)
    # Layer 2: (TILE_B,256) @ (256,128); columns 64..127 are zero pads -> zero h2 there.
    h2 = jnp.dot(h1, w2_ref[...], preferred_element_type=jnp.float32)
    h2 = jnp.maximum(h2 + b2_ref[...], 0.0).astype(jnp.bfloat16)
    # Layer 3: (TILE_B,128) @ (128,128); rows 64..127 and columns 10..127 are zero pads.
    out = jnp.dot(h2, w3_ref[...], preferred_element_type=jnp.float32) + b3_ref[...]
    o_ref[...] = out.astype(o_ref.dtype)


def mlp_forward(x, w1, b1, w2, b2, w3, b3):
    """x: (B, 1, 28, 28) float32 (NCHW). Returns (B, 10) f32 logits."""
    B = x.shape[0]
    x_flat = x.reshape(B, -1)  # nn.Flatten(): (B, 784); stays f32, cast happens in-kernel

    tile_b = _choose_tile_b(B)
    Bp = _round_up(B, tile_b)
    if Bp != B:
        # Tail-only pad (< tile_b rows); skipped entirely when B is already aligned.
        x_flat = jnp.pad(x_flat, ((0, Bp - B), (0, 0)))

    # bf16 weights (native MXU path); biases stay f32 for the f32 epilogues.
    w1b = w1.astype(jnp.bfloat16)
    b1f = b1.astype(jnp.float32)
    w2b = jnp.pad(w2, ((0, 0), (0, HIDDEN2_PAD - w2.shape[1]))).astype(jnp.bfloat16)
    b2f = jnp.pad(b2, ((0, 0), (0, HIDDEN2_PAD - b2.shape[1]))).astype(jnp.float32)
    w3b = jnp.pad(
        w3, ((0, HIDDEN2_PAD - w3.shape[0]), (0, OUT_PAD - w3.shape[1]))
    ).astype(jnp.bfloat16)
    b3p = jnp.pad(b3, ((0, 0), (0, OUT_PAD - b3.shape[1]))).astype(jnp.float32)

    grid = (Bp // tile_b,)
    # Weights/biases: constant index_map -> stay resident in VMEM across grid steps.
    resident = lambda shape: pl.BlockSpec(shape, lambda i: (0, 0))

    out_padded = pl.pallas_call(
        mlp_kernel,
        out_shape=jax.ShapeDtypeStruct((Bp, OUT_PAD), jnp.bfloat16),  # bf16 halves writeback
        grid=grid,
        in_specs=[
            pl.BlockSpec((tile_b, x_flat.shape[1]), lambda i: (i, 0)),  # activations over B
            resident(w1b.shape),
            resident(b1f.shape),
            resident(w2b.shape),
            resident(b2f.shape),
            resident(w3b.shape),
            resident(b3p.shape),
        ],
        out_specs=pl.BlockSpec((tile_b, OUT_PAD), lambda i: (i, 0)),
        compiler_params=pltpu.CompilerParams(
            dimension_semantics=("parallel",),   # v7x: shard batch tiles across both TCs
            vmem_limit_bytes=32 << 20,           # ~5 MiB working set at tile_b=512; ample headroom
        ),
    )(x_flat, w1b, b1f, w2b, b2f, w3b, b3p)

    return out_padded[:B, :10].astype(jnp.float32)


def init_params(key):
    """Deterministic init matching nn.Linear shapes (torch stores (out,in); here
    weights are kept pre-transposed as (in,out) for the kernel)."""
    k1, k2, k3, k4, k5, k6 = jax.random.split(key, 6)

    def uniform_init(k, shape, fan_in):
        bound = 1.0 / jnp.sqrt(fan_in)
        return jax.random.uniform(k, shape, jnp.float32, -bound, bound)

    w1 = uniform_init(k1, (28 * 28, 256), 28 * 28)   # Linear(784, 256).weight.T
    b1 = uniform_init(k2, (1, 256), 28 * 28)
    w2 = uniform_init(k3, (256, 64), 256)            # Linear(256, 64).weight.T
    b2 = uniform_init(k4, (1, 64), 256)
    w3 = uniform_init(k5, (64, 10), 64)              # Linear(64, 10).weight.T
    b3 = uniform_init(k6, (1, 10), 64)
    return w1, b1, w2, b2, w3, b3


if __name__ == "__main__":
    key = jax.random.PRNGKey(0)
    kx, kp = jax.random.split(key)

    B = 16  # small batch; tile_b=8 -> 2 grid steps exercises residency + the parallel grid
    x = jax.random.normal(kx, (B, 1, 28, 28), dtype=jnp.float32)
    params = init_params(kp)

    out = mlp_forward(x, *params)
    out = jax.block_until_ready(out)

    # Pure-JAX reference with identical numerics: bf16 matmuls, f32 accumulation,
    # f32 bias+ReLU epilogues, bf16 logit downcast.
    w1, b1, w2, b2, w3, b3 = params
    xf = x.reshape(B, -1).astype(jnp.bfloat16)
    h1 = jnp.maximum(
        jnp.dot(xf, w1.astype(jnp.bfloat16), preferred_element_type=jnp.float32) + b1, 0.0
    ).astype(jnp.bfloat16)
    h2 = jnp.maximum(
        jnp.dot(h1, w2.astype(jnp.bfloat16), preferred_element_type=jnp.float32) + b2, 0.0
    ).astype(jnp.bfloat16)
    ref = (
        jnp.dot(h2, w3.astype(jnp.bfloat16), preferred_element_type=jnp.float32) + b3
    ).astype(jnp.bfloat16).astype(jnp.float32)

    assert out.shape == (B, 10), out.shape
    assert jnp.allclose(out, ref, atol=1e-2, rtol=1e-2), "mismatch vs reference"

    print("KERNEL_OK")
</pallas_src>

<mosaic_0001>
module attributes {stable_mosaic.version = 11 : i64} {
  func.func @mlp_kernel(%arg0: i32, %arg1: memref<8x784xf32, #tpu.memory_space<vmem>>, %arg2: memref<784x256xbf16, #tpu.memory_space<vmem>>, %arg3: memref<1x256xf32, #tpu.memory_space<vmem>>, %arg4: memref<256x128xbf16, #tpu.memory_space<vmem>>, %arg5: memref<1x128xf32, #tpu.memory_space<vmem>>, %arg6: memref<128x128xbf16, #tpu.memory_space<vmem>>, %arg7: memref<1x128xf32, #tpu.memory_space<vmem>>, %arg8: memref<8x128xbf16, #tpu.memory_space<vmem>>) attributes {dimension_semantics = [#tpu.dimension_semantics<parallel>], iteration_bounds = array<i64: 2>, scalar_prefetch = 0 : i64, scratch_operands = 0 : i64, tpu.core_type = #tpu.core_type<tc>, window_params = [{transform_indices = @transform_0, window_bounds = array<i64: 8, 784>}, {pipeline_mode = #tpu.pipeline_mode<synchronous>, transform_indices = @transform_1, window_bounds = array<i64: 784, 256>}, {pipeline_mode = #tpu.pipeline_mode<synchronous>, transform_indices = @transform_2, window_bounds = array<i64: 1, 256>}, {pipeline_mode = #tpu.pipeline_mode<synchronous>, transform_indices = @transform_3, window_bounds = array<i64: 256, 128>}, {pipeline_mode = #tpu.pipeline_mode<synchronous>, transform_indices = @transform_4, window_bounds = array<i64: 1, 128>}, {pipeline_mode = #tpu.pipeline_mode<synchronous>, transform_indices = @transform_5, window_bounds = array<i64: 128, 128>}, {pipeline_mode = #tpu.pipeline_mode<synchronous>, transform_indices = @transform_6, window_bounds = array<i64: 1, 128>}, {transform_indices = @transform_7, window_bounds = array<i64: 8, 128>}]} {
    %c0 = arith.constant 0 : index
    %c0_0 = arith.constant 0 : index
    %0 = vector.load %arg1[%c0, %c0_0] : memref<8x784xf32, #tpu.memory_space<vmem>>, vector<8x784xf32>
    %1 = arith.truncf %0 : vector<8x784xf32> to vector<8x784xbf16>
    %c0_1 = arith.constant 0 : index
    %c0_2 = arith.constant 0 : index
    %2 = vector.load %arg2[%c0_1, %c0_2] : memref<784x256xbf16, #tpu.memory_space<vmem>>, vector<784x256xbf16>
    %cst = arith.constant dense<0.000000e+00> : vector<8x256xf32>
    %3 = tpu.matmul %1, %2, %cst {dimension_numbers = #tpu.dot_dimension_numbers<[1], [0], [0], [1], [0, 0, 1, 1], [], []>} : vector<8x784xbf16>, vector<784x256xbf16>, vector<8x256xf32> -> vector<8x256xf32>
    %c0_3 = arith.constant 0 : index
    %c0_4 = arith.constant 0 : index
    %4 = vector.load %arg3[%c0_3, %c0_4] : memref<1x256xf32, #tpu.memory_space<vmem>>, vector<1x256xf32>
    %5 = vector.broadcast %4 : vector<1x256xf32> to vector<8x256xf32>
    %6 = arith.addf %3, %5 : vector<8x256xf32>
    %cst_5 = arith.constant 0.000000e+00 : f32
    %7 = vector.broadcast %cst_5 : f32 to vector<8x256xf32>
    %8 = arith.maximumf %6, %7 : vector<8x256xf32>
    %9 = arith.truncf %8 : vector<8x256xf32> to vector<8x256xbf16>
    %c0_6 = arith.constant 0 : index
    %c0_7 = arith.constant 0 : index
    %10 = vector.load %arg4[%c0_6, %c0_7] : memref<256x128xbf16, #tpu.memory_space<vmem>>, vector<256x128xbf16>
    %cst_8 = arith.constant dense<0.000000e+00> : vector<8x128xf32>
    %11 = tpu.matmul %9, %10, %cst_8 {dimension_numbers = #tpu.dot_dimension_numbers<[1], [0], [0], [1], [0, 0, 1, 1], [], []>} : vector<8x256xbf16>, vector<256x128xbf16>, vector<8x128xf32> -> vector<8x128xf32>
    %c0_9 = arith.constant 0 : index
    %c0_10 = arith.constant 0 : index
    %12 = vector.load %arg5[%c0_9, %c0_10] : memref<1x128xf32, #tpu.memory_space<vmem>>, vector<1x128xf32>
    %13 = vector.broadcast %12 : vector<1x128xf32> to vector<8x128xf32>
    %14 = arith.addf %11, %13 : vector<8x128xf32>
    %cst_11 = arith.constant 0.000000e+00 : f32
    %15 = vector.broadcast %cst_11 : f32 to vector<8x128xf32>
    %16 = arith.maximumf %14, %15 : vector<8x128xf32>
    %17 = arith.truncf %16 : vector<8x128xf32> to vector<8x128xbf16>
    %c0_12 = arith.constant 0 : index
    %c0_13 = arith.constant 0 : index
    %18 = vector.load %arg6[%c0_12, %c0_13] : memref<128x128xbf16, #tpu.memory_space<vmem>>, vector<128x128xbf16>
    %cst_14 = arith.constant dense<0.000000e+00> : vector<8x128xf32>
    %19 = tpu.matmul %17, %18, %cst_14 {dimension_numbers = #tpu.dot_dimension_numbers<[1], [0], [0], [1], [0, 0, 1, 1], [], []>} : vector<8x128xbf16>, vector<128x128xbf16>, vector<8x128xf32> -> vector<8x128xf32>
    %c0_15 = arith.constant 0 : index
    %c0_16 = arith.constant 0 : index
    %20 = vector.load %arg7[%c0_15, %c0_16] : memref<1x128xf32, #tpu.memory_space<vmem>>, vector<1x128xf32>
    %21 = vector.broadcast %20 : vector<1x128xf32> to vector<8x128xf32>
    %22 = arith.addf %19, %21 : vector<8x128xf32>
    %23 = arith.truncf %22 : vector<8x128xf32> to vector<8x128xbf16>
    %c0_17 = arith.constant 0 : index
    %c0_18 = arith.constant 0 : index
    %24 = vector.load %arg8[%c0_17, %c0_18] : memref<8x128xbf16, #tpu.memory_space<vmem>>, vector<8x128xbf16>
    tpu.vector_store %arg8[%c0_17, %c0_18], %23 {strides = array<i32>} : memref<8x128xbf16, #tpu.memory_space<vmem>>, vector<8x128xbf16>,
    return
  }
  func.func @transform_0(%arg0: i32) -> (i32, i32) {
    %c0_i32 = arith.constant 0 : i32
    %c0_i32_0 = arith.constant 0 : i32
    return %arg0, %c0_i32 : i32, i32
  }
  func.func @transform_1(%arg0: i32) -> (i32, i32) {
    %c0_i32 = arith.constant 0 : i32
    %c0_i32_0 = arith.constant 0 : i32
    %c0_i32_1 = arith.constant 0 : i32
    return %c0_i32, %c0_i32_0 : i32, i32
  }
  func.func @transform_2(%arg0: i32) -> (i32, i32) {
    %c0_i32 = arith.constant 0 : i32
    %c0_i32_0 = arith.constant 0 : i32
    %c0_i32_1 = arith.constant 0 : i32
    return %c0_i32, %c0_i32_0 : i32, i32
  }
  func.func @transform_3(%arg0: i32) -> (i32, i32) {
    %c0_i32 = arith.constant 0 : i32
    %c0_i32_0 = arith.constant 0 : i32
    %c0_i32_1 = arith.constant 0 : i32
    return %c0_i32, %c0_i32_0 : i32, i32
  }
  func.func @transform_4(%arg0: i32) -> (i32, i32) {
    %c0_i32 = arith.constant 0 : i32
    %c0_i32_0 = arith.constant 0 : i32
    %c0_i32_1 = arith.constant 0 : i32
    return %c0_i32, %c0_i32_0 : i32, i32
  }
  func.func @transform_5(%arg0: i32) -> (i32, i32) {
    %c0_i32 = arith.constant 0 : i32
    %c0_i32_0 = arith.constant 0 : i32
    %c0_i32_1 = arith.constant 0 : i32
    return %c0_i32, %c0_i32_0 : i32, i32
  }
  func.func @transform_6(%arg0: i32) -> (i32, i32) {
    %c0_i32 = arith.constant 0 : i32
    %c0_i32_0 = arith.constant 0 : i32
    %c0_i32_1 = arith.constant 0 : i32
    return %c0_i32, %c0_i32_0 : i32, i32
  }
  func.func @transform_7(%arg0: i32) -> (i32, i32) {
    %c0_i32 = arith.constant 0 : i32
    %c0_i32_0 = arith.constant 0 : i32
    return %arg0, %c0_i32 : i32, i32
  }
}

</mosaic_0001>

<bundles_post_ra>
// kernel: tpu_custom_call.1
= control target key start
LH: loop header
LB: loop body
LE: loop exit
PB: predicated region body
PF: predicated region fallthrough
CT: control target
= control target key end

     0   :  { %s2734_s0 = inlined_call_operand.hbm [shape: f32[16,784], index: 0, kind: input, shape index: {}]   ;;  %s2735_s1 = inlined_call_operand.hbm [shape: bf16[784,256], index: 1, kind: input, shape index: {}]   ;;  %s2736_s2 = inlined_call_operand.hbm [shape: f32[1,256], index: 2, kind: input, shape index: {}]   ;;  %s2737_s3 = inlined_call_operand.hbm [shape: bf16[256,128], index: 3, kind: input, shape index: {}]   ;;  %s2738_s4 = inlined_call_operand.vmem [shape: f32[1,128], index: 4, kind: input, shape index: {}]   ;;  %s2739_s5 = inlined_call_operand.hbm [shape: bf16[128,128], index: 5, kind: input, shape index: {}]   ;;  %s2740_s6 = inlined_call_operand.vmem [shape: f32[1,128], index: 6, kind: input, shape index: {}]   ;;  %s2741_s7 = inlined_call_operand.hbm [shape: bf16[16,128], index: 7, kind: output, shape index: {}]  }
   0x1   :  { %2742 = sst [smem:[#allocation16_spill]] %s2735_s1 }
   0x2   :  { %2743 = sst [smem:[#allocation17_spill]] %s2736_s2 }
   0x3   :  { %2744 = sst [smem:[#allocation18_spill]] %s2737_s3 }
   0x4   :  { %12 = vsyncpa [#allocation3], 0 }
   0x5   :  { %14 = vsyncpa [#allocation3 + $0x1], 0 }
   0x6   :  { %15 = vsyncpa [#allocation6], 0 }
   0x7   :  { %16 = vsyncpa [#allocation9], 0 }
   0x8   :  { %17 = vsyncpa [#allocation4], 0 }
   0x9   :  { %19 = vsyncpa [#allocation4 + $0x1], 0  ;;  %s2527_s24 = smov 0   ;;  %s2529_s25 = smov 0  }
   0xa   :  { %s2531_s26 = smov 0   ;;  %s2533_s27 = smov 0  }
   0xb LB: > { %s2745_s1 = sld [smem:[#allocation16_spill]]  ;;  %s2551_s8 = sadd.s32 4294967295, %s2477_s27   ;;  %s2477_s27 = sphi %s2533_s27, %s2758_s27   ;;  %s2473_s26 = sphi %s2531_s26, %s2757_s26   ;;  %s2469_s25 = sphi %s2529_s25, %s2756_s25   ;;  %s2465_s24 = sphi %s2527_s24, %s2755_s24  }
   0xc   : > { %p1528_p0 = scmp.ge.s32.totalorder %s2477_s27, 1  ;;  %p46_p1 = scmp.eq.s32.totalorder %s2551_s8, 0 }
   0xd   : > { %p208_p2 = scmp.lt.s32.totalorder %s2477_s27, 3  ;;  %s2479_s10 = smov [#allocation5]  }
   0xe   : > { %s221_s11 = sshll.u32 %s2479_s10, 4  ;;  %s2747_s3 = sld [smem:[#allocation18_spill]]  ;;  %s222_s11 = int_to_ptr.vmem [resolvable:$true] %s221_s11 }
   0xf   : > { %p2556_p3 = pnand %p1528_p0, %p208_p2  ;;  %s2480_s16 = smov [#allocation8]  }
  0x10   : > { %s247_s17 = sshll.u32 %s2480_s16, 4  ;;  %s2481_s18 = smov 128   ;;  %s248_s17 = int_to_ptr.vmem [resolvable:$true] %s247_s17 }
  0x11   : > { %s219_s30 = sshll.u32 %s2745_s1, 4  ;;  %p2180_p4 = pneg %p2556_p3  ;;  %s220_s30 = int_to_ptr.hbm [resolvable:$true] %s219_s30 }
  0x12   : > { %s2482_s19 = smov 8   ;;  %s2483_s20 = smov 64  }
  0x13   : > { %p2568_p6 = pnand %p2180_p4, %p46_p1  ;;  %s2484_s21 = smov 4  }
  0x14   : > { %s245_s14 = sshll.u32 %s2747_s3, 4  ;;  %s2749_s2 = sld [smem:[#allocation17_spill]]  ;;  %s246_s14 = int_to_ptr.hbm [resolvable:$true] %s245_s14 }
  0x15   : > { %2183 = dma.hbm_to_vmem [thread:$0]  (!%p2568_p6), %s220_s30, 12544, %s222_s11, [#allocation6], %s2481_s18, %s2481_s18, %s2482_s19  }
  0x16   : > { %2189 = dma.hbm_to_vmem [thread:$0]  (!%p2568_p6), %s246_s14, 2048, %s248_s17, [#allocation9], %s2483_s20, %s2483_s20, %s2484_s21  }
  0x17   : > { %s2485_s29 = smov [#allocation7]   ;;  %s262_s12 = sshll.u32 %s2739_s5, 4  ;;  %s263_s12 = int_to_ptr.hbm [resolvable:$true] %s262_s12 }
  0x18   : > { %s236_s30 = sshll.u32 %s2485_s29, 4  ;;  %s2486_s13 = smov [#allocation10]   ;;  %s237_s30 = int_to_ptr.vmem [resolvable:$true] %s236_s30 }
  0x19   : > { %s264_s14 = sshll.u32 %s2486_s13, 4  ;;  %s1527_s16 = sadd.s32 4294967294, %s2477_s27   ;;  %s265_s14 = int_to_ptr.vmem [resolvable:$true] %s264_s14 }
  0x1a   : > { %s234_s28 = sshll.u32 %s2749_s2, 4  ;;  %s2588_s17 = sadd.s32 1, %s2477_s27   ;;  %s235_s28 = int_to_ptr.hbm [resolvable:$true] %s234_s28 }
  0x1b   : > { %2186 = dma.hbm_to_vmem [thread:$0]  (!%p2568_p6), %s235_s28, 32, %s237_s30, [#allocation6]  }
  0x1c   : > { %2192 = dma.hbm_to_vmem [thread:$0]  (!%p2568_p6), %s263_s12, 1024, %s265_s14, [#allocation9], %s2483_s20, %s2483_s20, %s2484_s21  }
  0x1d   : > { %s29_s18 = ssub.s32 %s2477_s27, %s2588_s17  ;;  %s32_s19 = sadd.s32 1, %s2473_s26 }
  0x1e   : > { %p30_p7 = scmp.eq.s32.totalorder %s29_s18, 0  ;;  %p39_p8 = scmp.ne.s32.totalorder %s2473_s26, %s2469_s25 }
  0x1f   : > { %p40_p9 = scmp.eq.s32.totalorder %s2477_s27, 0  ;;  %p45_p10 = scmp.ne.s32.totalorder %s2469_s25, %s2465_s24 }
  0x20   : > { %s2599_s22 = scalar_select %p30_p7, %s2473_s26, %s32_s19  }
  0x21   : > { %p41_p11 = por %p40_p9, %p39_p8  ;;  %p2603_p12 = por %p46_p1, %p45_p10 }
  0x22   : > { %p195_p13 = scmp.eq.s32.totalorder %s2551_s8, 1  ;;  %p201_p0 = scmp.eq.s32.totalorder %s1527_s16, 1 }
  0x23   : > { %p2205_p2 = scmp.lt.s32.totalorder %s2477_s27, 2  ;;  %s281_s15 = sand.u32 1, %s2473_s26  }
  0x24   : > { %p2610_p4 = por %p195_p13, %p39_p8  ;;  %p2614_p6 = por %p201_p0, %p45_p10 }
  0x25   : > { %s2157_s28 = smul.u32 56, %s281_s15  ;;  %p2619_p7 = pnand %p2205_p2, %p41_p11 }
  0x26   : > { %s2158_s29 = smul.u32 56, %s2477_s27  ;;  %s282_s18 = scalar_lea.sflag [#allocation3], %s281_s15 }
  0x27   : > { %s285_s13 = scalar_lea.vmem [#allocation2], %s2157_s28  ;;  %p2377_p9 = pneg %p2619_p7 }
  0x28   : > { %s290_s12 = scalar_lea.hbm %s2734_s0, %s2158_s29  ;;  %s294_s14 = sshll.u32 %s285_s13, 4  ;;  %s295_s14 = int_to_ptr.vmem [resolvable:$true] %s294_s14 }
  0x29   : > { %s292_s16 = sshll.u32 %s290_s12, 4  ;;  %s2380_s10 = scalar_lea.hbm %s2734_s0, 112  ;;  %s293_s16 = int_to_ptr.hbm [resolvable:$true] %s292_s16 }
  0x2a   : > { %s2373_s19 = sshra.s32 %s293_s16, 4  ;;  %s2374_s19 = int_to_ptr.hbm [resolvable:$true] %s2373_s19 }
  0x2b   : > { %s2375_s1 = scalar_lea.hbm %s2374_s19, 56  ;;  %p2381_p13 = scmp.lt.s32.totalorder %s2374_s19, %s2734_s0 }
  0x2c   : > { %p2376_p8 = scmp.ne.s32.totalorder %s2374_s19, %s2375_s1  ;;  %p2382_p0 = scmp.lt.s32.totalorder %s2380_s10, %s2375_s1 }
  0x2e   : > { %p2378_p10 = pnand %p2377_p9, %p2376_p8  ;;  %p2383_p2 = por %p2382_p0, %p2381_p13 }
  0x30   : > { %p2379_p11 = pneg %p2378_p10 }
  0x32   : > { %p2384_p5 = pnand %p2383_p2, %p2379_p11 }
  0x34   : > { %2387 = shalt.err (!%p2384_p5)
}
  0x35   : > { %2196 = dma.hbm_to_vmem [thread:$0]  (!%p2619_p7), %s293_s16, 896, %s295_s14, %s282_s18  }
  0x36   : > { %303 = sbr.rel (%p2556_p3) target bundleno = 593 (0x251), region = 48  ;;  %s2639_s15 = sand.u32 (!%p2556_p3), 1, %s2469_s25  }
  0x37   : > { %s2159_s2 = smul.u32 (!%p2556_p3), 56, %s2639_s15  ;;  %s306_s3 = scalar_lea.sflag (!%p2556_p3), [#allocation3], %s2639_s15 }
  0x39   : > { %s2643_s28 = scalar_lea.vmem (!%p2556_p3), [#allocation2], %s2159_s2 }
  0x3b   : > { %2448 = dma.done.wait (%p2603_p12), %s306_s3, 896  }
  0x3c   : > { %2450 = vsyncadd (%p2603_p12), %s306_s3, 4294966400 }
  0x3d   : > { %2452 = dma.done.wait (%p46_p1), [#allocation6], 12576  }
  0x3e   : > { %2454 = vsyncadd (%p46_p1), [#allocation6], 4294954720 }
  0x3f   : > { %2456 = dma.done.wait (%p46_p1), [#allocation9], 3072  }
  0x40   : > { %2458 = vsyncadd (%p46_p1), [#allocation9], 4294964224  ;;  %v1599_v0 = vld [vmem:[#allocation5 + $0x70] sm:$0xf]  ;;  %v2050_v1 = vld [vmem:[#allocation5 + $0x74] sm:$0xf0] }
  0x41   : > { %v1727_v2 = vld [vmem:[#allocation5 + $0x170] sm:$0xf]  ;;  %v1600_v3 = vor.u32 %v2050_v1, %v1599_v0  ;;  %v2082_v4 = vld [vmem:[#allocation5 + $0x174] sm:$0xf0]  ;;  %v1591_v11 = vld [vmem:[#allocation5 + $0x60] sm:$0xf] }
  0x42   : > { %v1791_v5 = vld [vmem:[#allocation5 + $0x1f0] sm:$0xf]  ;;  %v2098_v6 = vld [vmem:[#allocation5 + $0x1f4] sm:$0xf0]  ;;  %v1728_v7 = vor.u32 %v2082_v4, %v1727_v2  ;;  %v2048_v13 = vld [vmem:[#allocation5 + $0x64] sm:$0xf0] }
  0x43   : > { %v1792_v8 = vor.u32 %v2098_v6, %v1791_v5  ;;  %v1663_v9 = vld [vmem:[#allocation5 + $0xf0] sm:$0xf]  ;;  %v2066_v10 = vld [vmem:[#allocation5 + $0xf4] sm:$0xf0]  ;;  %974 = vmatpush.bf16.msra.mxu0 %v1600_v3  ;;  %v1719_v14 = vld [vmem:[#allocation5 + $0x160] sm:$0xf]  ;;  %v1592_v16 = vor.u32 %v2048_v13, %v1591_v11 }
  0x44   : > { %v1664_v12 = vor.u32 %v2066_v10, %v1663_v9  ;;  %v2080_v15 = vld [vmem:[#allocation5 + $0x164] sm:$0xf0]  ;;  %1000 = vmatpush.bf16.msra.mxu2 %v1728_v7  ;;  %v1783_v18 = vld [vmem:[#allocation5 + $0x1e0] sm:$0xf]  ;;  %v1583_v23 = vld [vmem:[#allocation5 + $0x50] sm:$0xf] }
  0x45   : > { %1013 = vmatpush.bf16.msra.mxu3 %v1792_v8  ;;  %v1720_v17 = vor.u32 %v2080_v15, %v1719_v14  ;;  %v2096_v19 = vld [vmem:[#allocation5 + $0x1e4] sm:$0xf0]  ;;  %v1655_v20 = vld [vmem:[#allocation5 + $0xe0] sm:$0xf]  ;;  %v2046_v24 = vld [vmem:[#allocation5 + $0x54] sm:$0xf0] }
  0x46   : > { %987 = vmatpush.bf16.msra.mxu1 %v1664_v12  ;;  %v1784_v21 = vor.u32 %v2096_v19, %v1783_v18  ;;  %v2064_v22 = vld [vmem:[#allocation5 + $0xe4] sm:$0xf0]  ;;  %v1711_v26 = vld [vmem:[#allocation5 + $0x150] sm:$0xf]  ;;  %v2078_v27 = vld [vmem:[#allocation5 + $0x154] sm:$0xf0]  ;;  %v1584_v29 = vor.u32 %v2046_v24, %v1583_v23 }
  0x47   : > { %v1656_v25 = vor.u32 %v2064_v22, %v1655_v20  ;;  %v1775_v28 = vld [vmem:[#allocation5 + $0x1d0] sm:$0xf]  ;;  %975 = vmatpush.bf16.msra.mxu0 %v1592_v16  ;;  %v2094_v30 = vld [vmem:[#allocation5 + $0x1d4] sm:$0xf0]  ;;  %v1712_v33 = vor.u32 %v2078_v27, %v1711_v26  ;;  %v1575_v35 = vld [vmem:[#allocation5 + $0x40] sm:$0xf] }
  0x48   : > { %v1647_v31 = vld [vmem:[#allocation5 + $0xd0] sm:$0xf]  ;;  %v2062_v32 = vld [vmem:[#allocation5 + $0xd4] sm:$0xf0]  ;;  %1001 = vmatpush.bf16.msra.mxu2 %v1720_v17  ;;  %v1776_v34 = vor.u32 %v2094_v30, %v1775_v28  ;;  %v2044_v36 = vld [vmem:[#allocation5 + $0x44] sm:$0xf0] }
  0x49   : > { %1014 = vmatpush.bf16.msra.mxu3 %v1784_v21  ;;  %v1703_v37 = vld [vmem:[#allocation5 + $0x140] sm:$0xf]  ;;  %v1648_v38 = vor.u32 %v2062_v32, %v1647_v31  ;;  %v2076_v39 = vld [vmem:[#allocation5 + $0x144] sm:$0xf0]  ;;  %v1576_v44 = vor.u32 %v2044_v36, %v1575_v35  ;;  %v1567_v47 = vld [vmem:[#allocation5 + $0x30] sm:$0xf] }
  0x4a   : > { %988 = vmatpush.bf16.msra.mxu1 %v1656_v25  ;;  %v1767_v40 = vld [vmem:[#allocation5 + $0x1c0] sm:$0xf]  ;;  %v2092_v41 = vld [vmem:[#allocation5 + $0x1c4] sm:$0xf0]  ;;  %v1704_v45 = vor.u32 %v2076_v39, %v1703_v37  ;;  %v2042_v48 = vld [vmem:[#allocation5 + $0x34] sm:$0xf0] }
  0x4b   : > { %v1639_v42 = vld [vmem:[#allocation5 + $0xc0] sm:$0xf]  ;;  %v2060_v43 = vld [vmem:[#allocation5 + $0xc4] sm:$0xf0]  ;;  %976 = vmatpush.bf16.msra.mxu0 %v1584_v29  ;;  %v1768_v46 = vor.u32 %v2092_v41, %v1767_v40  ;;  %v1695_v49 = vld [vmem:[#allocation5 + $0x130] sm:$0xf]  ;;  %v1568_v56 = vor.u32 %v2042_v48, %v1567_v47 }
  0x4c   : > { %1002 = vmatpush.bf16.msra.mxu2 %v1712_v33  ;;  %v1640_v50 = vor.u32 %v2060_v43, %v1639_v42  ;;  %v2074_v51 = vld [vmem:[#allocation5 + $0x134] sm:$0xf0]  ;;  %v1759_v52 = vld [vmem:[#allocation5 + $0x1b0] sm:$0xf]  ;;  %v1559_v59 = vld [vmem:[#allocation5 + $0x20] sm:$0xf] }
  0x4d   : > { %1015 = vmatpush.bf16.msra.mxu3 %v1776_v34  ;;  %v2090_v53 = vld [vmem:[#allocation5 + $0x1b4] sm:$0xf0]  ;;  %v1631_v54 = vld [vmem:[#allocation5 + $0xb0] sm:$0xf]  ;;  %v1696_v57 = vor.u32 %v2074_v51, %v1695_v49  ;;  %v2040_v60 = vld [vmem:[#allocation5 + $0x24] sm:$0xf0] }
  0x4e   : > { %989 = vmatpush.bf16.msra.mxu1 %v1648_v38  ;;  %v2058_v55 = vld [vmem:[#allocation5 + $0xb4] sm:$0xf0]  ;;  %v1760_v58 = vor.u32 %v2090_v53, %v1759_v52  ;;  %v1687_v61 = vld [vmem:[#allocation5 + $0x120] sm:$0xf]  ;;  %v2072_v63 = vld [vmem:[#allocation5 + $0x124] sm:$0xf0]  ;;  %v1560_v4 = vor.u32 %v2040_v60, %v1559_v59 }
  0x4f   : > { %977 = vmatpush.bf16.msra.mxu0 %v1576_v44  ;;  %v1632_v62 = vor.u32 %v2058_v55, %v1631_v54  ;;  %v1751_v0 = vld [vmem:[#allocation5 + $0x1a0] sm:$0xf]  ;;  %v2088_v1 = vld [vmem:[#allocation5 + $0x1a4] sm:$0xf0]  ;;  %v1688_v5 = vor.u32 %v2072_v63, %v1687_v61  ;;  %v1551_v7 = vld [vmem:[#allocation5 + $0x10] sm:$0xf] }
  0x50   : > { %1003 = vmatpush.bf16.msra.mxu2 %v1704_v45  ;;  %v1623_v2 = vld [vmem:[#allocation5 + $0xa0] sm:$0xf]  ;;  %v2056_v3 = vld [vmem:[#allocation5 + $0xa4] sm:$0xf0]  ;;  %v1752_v6 = vor.u32 %v2088_v1, %v1751_v0  ;;  %v2038_v8 = vld [vmem:[#allocation5 + $0x14] sm:$0xf0] }
  0x51   : > { %1016 = vmatpush.bf16.msra.mxu3 %v1768_v46  ;;  %v1679_v9 = vld [vmem:[#allocation5 + $0x110] sm:$0xf]  ;;  %v1624_v10 = vor.u32 %v2056_v3, %v1623_v2  ;;  %v2070_v11 = vld [vmem:[#allocation5 + $0x114] sm:$0xf0]  ;;  %v1552_v16 = vor.u32 %v2038_v8, %v1551_v7  ;;  %v1543_v17 = vld [vmem:[#allocation5] sm:$0xf] }
  0x52   : > { %990 = vmatpush.bf16.msra.mxu1 %v1640_v50  ;;  %v1743_v12 = vld [vmem:[#allocation5 + $0x190] sm:$0xf]  ;;  %v2086_v13 = vld [vmem:[#allocation5 + $0x194] sm:$0xf0]  ;;  %v2036_v18 = vld [vmem:[#allocation5 + $0x4] sm:$0xf0]  ;;  %v1680_v20 = vor.u32 %v2070_v11, %v1679_v9 }
  0x53   : > { %978 = vmatpush.bf16.msra.mxu0 %v1568_v56  ;;  %v1615_v14 = vld [vmem:[#allocation5 + $0x90] sm:$0xf]  ;;  %v2054_v15 = vld [vmem:[#allocation5 + $0x94] sm:$0xf0]  ;;  %v1671_v19 = vld [vmem:[#allocation5 + $0x100] sm:$0xf]  ;;  %v1744_v21 = vor.u32 %v2086_v13, %v1743_v12  ;;  %v1544_v32 = vor.u32 %v2036_v18, %v1543_v17 }
  0x54   : > { %1004 = vmatpush.bf16.msra.mxu2 %v1696_v57  ;;  %v2068_v22 = vld [vmem:[#allocation5 + $0x104] sm:$0xf0]  ;;  %v1735_v23 = vld [vmem:[#allocation5 + $0x180] sm:$0xf]  ;;  %v1616_v25 = vor.u32 %v2054_v15, %v1615_v14  ;;  %v1855_v26 = vld [vmem:[#allocation5 + $0x270] sm:$0xf] }
  0x55   : > { %1017 = vmatpush.bf16.msra.mxu3 %v1760_v58  ;;  %v2084_v24 = vld [vmem:[#allocation5 + $0x184] sm:$0xf0]  ;;  %v2114_v27 = vld [vmem:[#allocation5 + $0x274] sm:$0xf0]  ;;  %v2049_v28 = vld [vmem:[#allocation5 + $0x74] sm:$0xf]  ;;  %v1672_v36 = vor.u32 %v2068_v22, %v1671_v19 }
  0x56   : > { %991 = vmatpush.bf16.msra.mxu1 %v1632_v62  ;;  %v1601_v29 = vld [vmem:[#allocation5 + $0x78] sm:$0xf0]  ;;  %v1607_v30 = vld [vmem:[#allocation5 + $0x80] sm:$0xf]  ;;  %v2052_v31 = vld [vmem:[#allocation5 + $0x84] sm:$0xf0]  ;;  %v1736_v37 = vor.u32 %v2084_v24, %v1735_v23  ;;  %v1856_v41 = vor.u32 %v2114_v27, %v1855_v26 }
  0x57   : > { %979 = vmatpush.bf16.msra.mxu0 %v1560_v4  ;;  %v364_v33 = vld [vmem:[%s2643_s28 + $0x10] sm:$0xff]  ;;  %v2132_v35 = vld [vmem:[#allocation5 + $0x304] sm:$0xf0]  ;;  %v1919_v38 = vld [vmem:[#allocation5 + $0x2f0] sm:$0xf]  ;;  %v1604_v42 = vor.u32 %v2049_v28, %v1601_v29  ;;  %v1608_v46 = vor.u32 %v2052_v31, %v1607_v30  ;;  %vm970_vm0 = vcmask 130048  }
  0x58   : > { %1005 = vmatpush.bf16.msra.mxu2 %v1688_v5  ;;  %v1927_v34 = vld [vmem:[#allocation5 + $0x300] sm:$0xf]  ;;  %v2130_v39 = vld [vmem:[#allocation5 + $0x2f4] sm:$0xf0]  ;;  %v2065_v40 = vld [vmem:[#allocation5 + $0xf4] sm:$0xf]  ;;  %v2659_v51 = vpack.c.bf16 %v364_v33, %v364_v33 }
  0x59   : > { %1018 = vmatpush.bf16.msra.mxu3 %v1752_v6  ;;  %v1665_v43 = vld [vmem:[#allocation5 + $0xf8] sm:$0xf0]  ;;  %v1847_v44 = vld [vmem:[#allocation5 + $0x260] sm:$0xf]  ;;  %v362_v45 = vld [vmem:[%s2643_s28] sm:$0xff]  ;;  %v1928_v47 = vor.u32 %v2132_v35, %v1927_v34  ;;  %v1920_v52 = vor.u32 %v2130_v39, %v1919_v38  ;;  %s1540_s23 = sshll.u32 %s2639_s15, 2 }
  0x5a   : > { %992 = vmatpush.bf16.msra.mxu1 %v1624_v10  ;;  %v2112_v48 = vld [vmem:[#allocation5 + $0x264] sm:$0xf0]  ;;  %v2047_v49 = vld [vmem:[#allocation5 + $0x64] sm:$0xf]  ;;  %v1593_v50 = vld [vmem:[#allocation5 + $0x68] sm:$0xf0]  ;;  %v1668_v55 = vor.u32 %v2065_v40, %v1665_v43  ;;  %v2663_v56 = vpack.c.bf16 %v362_v45, %v362_v45 }
  0x5b   : > { %980 = vmatpush.bf16.msra.mxu0 %v1552_v16  ;;  %v365_v53 = vld [vmem:[%s2643_s28 + $0x18] sm:$0xff]  ;;  %v363_v54 = vld [vmem:[%s2643_s28 + $0x8] sm:$0xff]  ;;  %v1848_v59 = vor.u32 %v2112_v48, %v1847_v44  ;;  %v1596_v60 = vor.u32 %v2047_v49, %v1593_v50  ;;  %v368_v33 = vld [vmem:[%s2643_s28 + $0x30] sm:$0xff]  ;;  %s2032_s30 = sshll.u32 %s2551_s8, 2  ;;  %s360_s19 = scalar_lea.vmem [#allocation11], %s1540_s23 }
  0x5c   : > { %1006 = vmatpush.bf16.msra.mxu2 %v1680_v20  ;;  %v1911_v57 = vld [vmem:[#allocation5 + $0x2e0] sm:$0xf]  ;;  %v2128_v58 = vld [vmem:[#allocation5 + $0x2e4] sm:$0xf0]  ;;  %v2063_v61 = vld [vmem:[#allocation5 + $0xe4] sm:$0xf]  ;;  %v2665_v0 = vpack.c.bf16 %v365_v53, %v365_v53  ;;  %v2667_v1 = vpack.c.bf16 %v363_v54, %v363_v54  ;;  %v2674_v43 = vpack.c.bf16 %v368_v33, %v368_v33  ;;  %s1414_s18 = scalar_lea.hbm %s2741_s7, %s2032_s30 }
  0x5d   : > { %1019 = vmatpush.bf16.msra.mxu3 %v1744_v21  ;;  %v1657_v62 = vld [vmem:[#allocation5 + $0xe8] sm:$0xf0]  ;;  %v1839_v63 = vld [vmem:[#allocation5 + $0x250] sm:$0xf]  ;;  %v2110_v2 = vld [vmem:[#allocation5 + $0x254] sm:$0xf0]  ;;  %v1912_v5 = vor.u32 %v2128_v58, %v1911_v57 }
  0x5e   : > { %993 = vmatpush.bf16.msra.mxu1 %v1616_v25  ;;  %v2045_v3 = vld [vmem:[#allocation5 + $0x54] sm:$0xf]  ;;  %v1585_v4 = vld [vmem:[#allocation5 + $0x58] sm:$0xf0]  ;;  %v1660_v6 = vor.u32 %v2063_v61, %v1657_v62  ;;  %v1903_v7 = vld [vmem:[#allocation5 + $0x2d0] sm:$0xf]  ;;  %v1840_v9 = vor.u32 %v2110_v2, %v1839_v63 }
  0x5f   : > { %981 = vmatpush.bf16.msra.mxu0 %v1544_v32  ;;  %v2126_v8 = vld [vmem:[#allocation5 + $0x2d4] sm:$0xf0]  ;;  %v1588_v10 = vor.u32 %v2045_v3, %v1585_v4  ;;  %v2061_v11 = vld [vmem:[#allocation5 + $0xd4] sm:$0xf]  ;;  %v1649_v12 = vld [vmem:[#allocation5 + $0xd8] sm:$0xf0] }
  0x60   : > { %1007 = vmatpush.bf16.msra.mxu2 %v1672_v36  ;;  %v1831_v13 = vld [vmem:[#allocation5 + $0x240] sm:$0xf]  ;;  %v2108_v14 = vld [vmem:[#allocation5 + $0x244] sm:$0xf0]  ;;  %v2043_v15 = vld [vmem:[#allocation5 + $0x44] sm:$0xf]  ;;  %v1904_v17 = vor.u32 %v2126_v8, %v1903_v7  ;;  %v1652_v18 = vor.u32 %v2061_v11, %v1649_v12 }
  0x61   : > { %1020 = vmatpush.bf16.msra.mxu3 %v1736_v37  ;;  %v1577_v16 = vld [vmem:[#allocation5 + $0x48] sm:$0xf0]  ;;  %v1895_v19 = vld [vmem:[#allocation5 + $0x2c0] sm:$0xf]  ;;  %v2124_v20 = vld [vmem:[#allocation5 + $0x2c4] sm:$0xf0]  ;;  %v1832_v21 = vor.u32 %v2108_v14, %v1831_v13 }
  0x62   : > { %994 = vmatpush.bf16.msra.mxu1 %v1608_v46  ;;  %982 = vmatmul.bf16.vlgmr.msra.gmra.mxu0 %v2663_v56  ;;  %v1580_v22 = vor.u32 %v2043_v15, %v1577_v16  ;;  %v2059_v23 = vld [vmem:[#allocation5 + $0xc4] sm:$0xf]  ;;  %v1641_v24 = vld [vmem:[#allocation5 + $0xc8] sm:$0xf0]  ;;  %v1823_v25 = vld [vmem:[#allocation5 + $0x230] sm:$0xf]  ;;  %v1896_v29 = vor.u32 %v2124_v20, %v1895_v19 }
  0x63   : > { %1026 = vmatpush.bf16.msrb.mxu0 %v1856_v41  ;;  %1008 = vmatmul.bf16.vlgmr.msra.gmra.mxu2 %v2659_v51  ;;  %v2106_v26 = vld [vmem:[#allocation5 + $0x234] sm:$0xf0]  ;;  %v2041_v27 = vld [vmem:[#allocation5 + $0x34] sm:$0xf]  ;;  %v1569_v28 = vld [vmem:[#allocation5 + $0x38] sm:$0xf0]  ;;  %v1644_v30 = vor.u32 %v2059_v23, %v1641_v24 }
  0x64   : > { %1059 = vmatpush.bf16.msrb.mxu2 %v1928_v47  ;;  %1021 = vmatmul.bf16.vlgmr.msra.gmra.mxu3 %v2665_v0  ;;  %v1887_v31 = vld [vmem:[#allocation5 + $0x2b0] sm:$0xf]  ;;  %v2122_v32 = vld [vmem:[#allocation5 + $0x2b4] sm:$0xf0]  ;;  %v1824_v34 = vor.u32 %v2106_v26, %v1823_v25  ;;  %v1572_v35 = vor.u32 %v2041_v27, %v1569_v28  ;;  %v2057_v36 = vld [vmem:[#allocation5 + $0xb4] sm:$0xf] }
  0x65   : > { %1065 = vmatpush.bf16.msrb.mxu3 %v1604_v42  ;;  %995 = vmatmul.bf16.vlgmr.msra.gmra.mxu1 %v2667_v1  ;;  %v1633_v37 = vld [vmem:[#allocation5 + $0xb8] sm:$0xf0]  ;;  %v1815_v38 = vld [vmem:[#allocation5 + $0x220] sm:$0xf]  ;;  %v2104_v39 = vld [vmem:[#allocation5 + $0x224] sm:$0xf0]  ;;  %v1888_v42 = vor.u32 %v2122_v32, %v1887_v31 }
  0x66   : > { %1039 = vmatpush.bf16.msrb.mxu1 %v1920_v52  ;;  %v2039_v40 = vld [vmem:[#allocation5 + $0x24] sm:$0xf]  ;;  %v1561_v41 = vld [vmem:[#allocation5 + $0x28] sm:$0xf0]  ;;  %v1636_v44 = vor.u32 %v2057_v36, %v1633_v37  ;;  %v1879_v45 = vld [vmem:[#allocation5 + $0x2a0] sm:$0xf]  ;;  %v1816_v47 = vor.u32 %v2104_v39, %v1815_v38 }
  0x67   : > { %1027 = vmatpush.bf16.msrb.mxu0 %v1848_v59  ;;  %v2120_v46 = vld [vmem:[#allocation5 + $0x2a4] sm:$0xf0]  ;;  %v1564_v48 = vor.u32 %v2039_v40, %v1561_v41  ;;  %v2055_v49 = vld [vmem:[#allocation5 + $0xa4] sm:$0xf]  ;;  %v1625_v50 = vld [vmem:[#allocation5 + $0xa8] sm:$0xf0] }
  0x68   : > { %1078 = vmatpush.bf16.msra.mxu2 %v1668_v55  ;;  %v1807_v52 = vld [vmem:[#allocation5 + $0x210] sm:$0xf]  ;;  %v2102_v53 = vld [vmem:[#allocation5 + $0x214] sm:$0xf0]  ;;  %v2037_v54 = vld [vmem:[#allocation5 + $0x14] sm:$0xf]  ;;  %v1880_v57 = vor.u32 %v2120_v46, %v1879_v45  ;;  %v1628_v58 = vor.u32 %v2055_v49, %v1625_v50 }
  0x69   : > { %1066 = vmatpush.bf16.msrb.mxu3 %v1596_v60  ;;  %v1553_v55 = vld [vmem:[#allocation5 + $0x18] sm:$0xf0]  ;;  %v1871_v59 = vld [vmem:[#allocation5 + $0x290] sm:$0xf]  ;;  %v2118_v60 = vld [vmem:[#allocation5 + $0x294] sm:$0xf0]  ;;  %v1808_v62 = vor.u32 %v2102_v53, %v1807_v52 }
  0x6a   : > { %1040 = vmatpush.bf16.msrb.mxu1 %v1912_v5  ;;  %v2053_v61 = vld [vmem:[#allocation5 + $0x94] sm:$0xf]  ;;  %v1556_v63 = vor.u32 %v2037_v54, %v1553_v55  ;;  %v1617_v2 = vld [vmem:[#allocation5 + $0x98] sm:$0xf0]  ;;  %v1799_v3 = vld [vmem:[#allocation5 + $0x200] sm:$0xf]  ;;  %v1872_v8 = vor.u32 %v2118_v60, %v1871_v59 }
  0x6b   : > { %1028 = vmatpush.bf16.msrb.mxu0 %v1840_v9  ;;  %v2100_v4 = vld [vmem:[#allocation5 + $0x204] sm:$0xf0]  ;;  %v2035_v5 = vld [vmem:[#allocation5 + $0x4] sm:$0xf]  ;;  %v2081_v7 = vld [vmem:[#allocation5 + $0x174] sm:$0xf]  ;;  %v1620_v12 = vor.u32 %v2053_v61, %v1617_v2 }
  0x6c   : > { %1079 = vmatpush.bf16.msra.mxu2 %v1660_v6  ;;  %v1545_v6 = vld [vmem:[#allocation5 + $0x8] sm:$0xf0]  ;;  %v1729_v9 = vld [vmem:[#allocation5 + $0x178] sm:$0xf0]  ;;  %v1863_v13 = vld [vmem:[#allocation5 + $0x280] sm:$0xf]  ;;  %v1800_v16 = vor.u32 %v2100_v4, %v1799_v3 }
  0x6d   : > { %1067 = vmatpush.bf16.msrb.mxu3 %v1588_v10  ;;  %v2113_v10 = vld [vmem:[#allocation5 + $0x274] sm:$0xf]  ;;  %v1857_v11 = vld [vmem:[#allocation5 + $0x278] sm:$0xf0]  ;;  %v2116_v14 = vld [vmem:[#allocation5 + $0x284] sm:$0xf0] }
  0x6e   : > { %1041 = vmatpush.bf16.msrb.mxu1 %v1904_v17  ;;  %v366_v15 = vld [vmem:[%s2643_s28 + $0x20] sm:$0xff]  ;;  %v1548_v17 = vor.u32 %v2035_v5, %v1545_v6  ;;  %v1793_v23 = vld [vmem:[#allocation5 + $0x1f8] sm:$0xf0]  ;;  %v1864_v26 = vor.u32 %v2116_v14, %v1863_v13  ;;  %v2079_v28 = vld [vmem:[#allocation5 + $0x164] sm:$0xf]  ;;  %s1416_s10 = sshll.u32 %s360_s19, 4  ;;  %s1417_s10 = int_to_ptr.vmem [resolvable:$true] %s1416_s10 }
  0x6f   : > { %1029 = vmatpush.bf16.msrb.mxu0 %v1832_v21  ;;  %v1609_v19 = vld [vmem:[#allocation5 + $0x88] sm:$0xf0]  ;;  %v2097_v20 = vld [vmem:[#allocation5 + $0x1f4] sm:$0xf]  ;;  %v1732_v21 = vor.u32 %v2081_v7, %v1729_v9  ;;  %v1921_v25 = vld [vmem:[#allocation5 + $0x2f8] sm:$0xf0] }
  0x70   : > { %1080 = vmatpush.bf16.msra.mxu2 %v1652_v18  ;;  %v2051_v18 = vld [vmem:[#allocation5 + $0x84] sm:$0xf]  ;;  %v2129_v24 = vld [vmem:[#allocation5 + $0x2f4] sm:$0xf]  ;;  %v1849_v33 = vld [vmem:[#allocation5 + $0x268] sm:$0xf0] }
  0x71   : > { %1068 = vmatpush.bf16.msrb.mxu3 %v1580_v22  ;;  %v1860_v22 = vor.u32 %v2113_v10, %v1857_v11  ;;  %v367_v27 = vld [vmem:[%s2643_s28 + $0x28] sm:$0xff]  ;;  %v1612_v31 = vor.u32 %v2051_v18, %v1609_v19  ;;  %v2111_v32 = vld [vmem:[#allocation5 + $0x264] sm:$0xf]  ;;  %v1785_v39 = vld [vmem:[#allocation5 + $0x1e8] sm:$0xf0]  ;;  %s1418_s11 = sshll.u32 %s1414_s18, 4  ;;  %s1419_s11 = int_to_ptr.hbm [resolvable:$true] %s1418_s11 }
  0x72   : > { %1042 = vmatpush.bf16.msrb.mxu1 %v1896_v29  ;;  %v1721_v29 = vld [vmem:[#allocation5 + $0x168] sm:$0xf0]  ;;  %v2095_v36 = vld [vmem:[#allocation5 + $0x1e4] sm:$0xf]  ;;  %v2682_v37 = vpack.c.bf16 %v367_v27, %v367_v27  ;;  %v1713_v45 = vld [vmem:[#allocation5 + $0x158] sm:$0xf0] }
  0x73   : > { %1030 = vmatpush.bf16.msrb.mxu0 %v1824_v34  ;;  %1933 = vmatmul.msk.bf16.vlgmr.msrb.gmra.mxu2 %vm970_vm0, %v2674_v43  ;;  %v1796_v34 = vor.u32 %v2097_v20, %v1793_v23  ;;  %v1724_v38 = vor.u32 %v2079_v28, %v1721_v29  ;;  %v2127_v40 = vld [vmem:[#allocation5 + $0x2e4] sm:$0xf]  ;;  %v1913_v41 = vld [vmem:[#allocation5 + $0x2e8] sm:$0xf0]  ;;  %v2109_v46 = vld [vmem:[#allocation5 + $0x254] sm:$0xf] }
  0x74   : > { %1081 = vmatpush.bf16.msra.mxu2 %v1644_v30  ;;  %v2680_v30 = vpack.c.bf16 %v366_v15, %v366_v15  ;;  %v1916_v49 = vor.u32 %v2127_v40, %v1913_v41  ;;  %v2093_v50 = vld [vmem:[#allocation5 + $0x1d4] sm:$0xf]  ;;  %v1777_v53 = vld [vmem:[#allocation5 + $0x1d8] sm:$0xf0]  ;;  %v1705_v59 = vld [vmem:[#allocation5 + $0x148] sm:$0xf0] }
  0x75   : > { %1069 = vmatpush.bf16.msrb.mxu3 %v1572_v35  ;;  %v1924_v35 = vor.u32 %v2129_v24, %v1921_v25  ;;  %v2125_v54 = vld [vmem:[#allocation5 + $0x2d4] sm:$0xf]  ;;  %v1905_v55 = vld [vmem:[#allocation5 + $0x2d8] sm:$0xf0]  ;;  %v2107_v60 = vld [vmem:[#allocation5 + $0x244] sm:$0xf] }
  0x76   : > { %1043 = vmatpush.bf16.msrb.mxu1 %v1888_v42  ;;  %v1852_v42 = vor.u32 %v2111_v32, %v1849_v33  ;;  %v1833_v61 = vld [vmem:[#allocation5 + $0x248] sm:$0xf0]  ;;  %v2091_v2 = vld [vmem:[#allocation5 + $0x1c4] sm:$0xf]  ;;  %v2105_v9 = vld [vmem:[#allocation5 + $0x234] sm:$0xf] }
  0x77   : > { %1031 = vmatpush.bf16.msrb.mxu0 %v1816_v47  ;;  %v1841_v47 = vld [vmem:[#allocation5 + $0x258] sm:$0xf0]  ;;  %v1769_v4 = vld [vmem:[#allocation5 + $0x1c8] sm:$0xf0]  ;;  %v2123_v5 = vld [vmem:[#allocation5 + $0x2c4] sm:$0xf]  ;;  %v1836_v7 = vor.u32 %v2107_v60, %v1833_v61 }
  0x78   : > { %1082 = vmatpush.bf16.msra.mxu2 %v1636_v44  ;;  %v2077_v44 = vld [vmem:[#allocation5 + $0x154] sm:$0xf]  ;;  %v1897_v6 = vld [vmem:[#allocation5 + $0x2c8] sm:$0xf0]  ;;  %v1825_v10 = vld [vmem:[#allocation5 + $0x238] sm:$0xf0]  ;;  %v1772_v11 = vor.u32 %v2091_v2, %v1769_v4 }
  0x79   : > { %1070 = vmatpush.bf16.msrb.mxu3 %v1564_v48  ;;  %v1788_v48 = vor.u32 %v2095_v36, %v1785_v39  ;;  %v1716_v52 = vor.u32 %v2077_v44, %v1713_v45  ;;  %v1761_v14 = vld [vmem:[#allocation5 + $0x1b8] sm:$0xf0]  ;;  %v2121_v15 = vld [vmem:[#allocation5 + $0x2b4] sm:$0xf]  ;;  %v2071_v18 = vld [vmem:[#allocation5 + $0x124] sm:$0xf] }
  0x7a   : > { %1044 = vmatpush.bf16.msrb.mxu1 %v1880_v57  ;;  %v1844_v57 = vor.u32 %v2109_v46, %v1841_v47  ;;  %v1689_v19 = vld [vmem:[#allocation5 + $0x128] sm:$0xf0]  ;;  %v2103_v20 = vld [vmem:[#allocation5 + $0x224] sm:$0xf]  ;;  %v1681_v32 = vld [vmem:[#allocation5 + $0x118] sm:$0xf0] }
  0x7b   : > { %1032 = vmatpush.bf16.msrb.mxu0 %v1808_v62  ;;  %v1780_v62 = vor.u32 %v2093_v50, %v1777_v53  ;;  %v2087_v24 = vld [vmem:[#allocation5 + $0x1a4] sm:$0xf]  ;;  %v1692_v25 = vor.u32 %v2071_v18, %v1689_v19  ;;  %v1881_v28 = vld [vmem:[#allocation5 + $0x2a8] sm:$0xf0]  ;;  %v2101_v33 = vld [vmem:[#allocation5 + $0x214] sm:$0xf] }
  0x7c   : > { %1083 = vmatpush.bf16.msra.mxu2 %v1628_v58  ;;  %v2075_v58 = vld [vmem:[#allocation5 + $0x144] sm:$0xf]  ;;  %v1745_v40 = vld [vmem:[#allocation5 + $0x198] sm:$0xf0]  ;;  %v2117_v41 = vld [vmem:[#allocation5 + $0x294] sm:$0xf] }
  0x7d   : > { %1071 = vmatpush.bf16.msrb.mxu3 %v1556_v63  ;;  %v1908_v63 = vor.u32 %v2125_v54, %v1905_v55  ;;  %v1708_v3 = vor.u32 %v2075_v58, %v1705_v59  ;;  %v2119_v27 = vld [vmem:[#allocation5 + $0x2a4] sm:$0xf]  ;;  %v1673_v46 = vld [vmem:[#allocation5 + $0x108] sm:$0xf0]  ;;  %v2138_v4 = vld [vmem:[#allocation8 + $0x28] sm:$0xff]  ;;  %s1404_s29 = scalar_lea.sflag [#allocation4], %s2639_s15 }
  0x7e   : > { %1045 = vmatpush.bf16.msrb.mxu1 %v1872_v8  ;;  %v2073_v8 = vld [vmem:[#allocation5 + $0x134] sm:$0xf]  ;;  %v1884_v36 = vor.u32 %v2119_v27, %v1881_v28  ;;  %v2067_v45 = vld [vmem:[#allocation5 + $0x104] sm:$0xf]  ;;  %v1737_v54 = vld [vmem:[#allocation5 + $0x188] sm:$0xf0] }
  0x7f   : > { %1033 = vmatpush.bf16.msrb.mxu0 %v1800_v16  ;;  %v1889_v16 = vld [vmem:[#allocation5 + $0x2b8] sm:$0xf0]  ;;  %v2099_v47 = vld [vmem:[#allocation5 + $0x204] sm:$0xf]  ;;  %v1865_v58 = vld [vmem:[#allocation5 + $0x288] sm:$0xf0] }
  0x80   : > { %1084 = vmatpush.bf16.msra.mxu2 %v1620_v12  ;;  %v2089_v12 = vld [vmem:[#allocation5 + $0x1b4] sm:$0xf]  ;;  %v1892_v23 = vor.u32 %v2121_v15, %v1889_v16  ;;  %v2083_v53 = vld [vmem:[#allocation5 + $0x184] sm:$0xf]  ;;  %v1929_v60 = vld [vmem:[#allocation5 + $0x308] sm:$0xf0] }
  0x81   : > { %1072 = vmatpush.bf16.msrb.mxu3 %v1548_v17  ;;  %v1828_v17 = vor.u32 %v2105_v9, %v1825_v10  ;;  %v2131_v59 = vld [vmem:[#allocation5 + $0x304] sm:$0xf]  ;;  %v1740_v61 = vor.u32 %v2083_v53, %v1737_v54  ;;  %v2140_v2 = vld [vmem:[#allocation8 + $0x38] sm:$0xff]  ;;  %s2417_s8 = sshra.s32 %s1419_s11, 4  ;;  %s2423_s1 = scalar_lea.hbm %s2741_s7, 8  ;;  %s2418_s8 = int_to_ptr.hbm [resolvable:$true] %s2417_s8 }
  0x82   : > { %1046 = vmatpush.bf16.msrb.mxu1 %v1864_v26  ;;  %1034 = vmatmul.bf16.vlgmr.msrb.gmra.mxu0 %v2680_v30  ;;  %v1753_v26 = vld [vmem:[#allocation5 + $0x1a8] sm:$0xf0]  ;;  %s2419_s2 = scalar_lea.hbm %s2418_s8, 4  ;;  %p2424_p12 = scmp.lt.s32.totalorder %s2418_s8, %s2741_s7 }
  0x83   : > { %1091 = vmatpush.bf16.msra.mxu0 %v1732_v21  ;;  %v1817_v21 = vld [vmem:[#allocation5 + $0x228] sm:$0xf0]  ;;  %p2420_p1 = scmp.ne.s32.totalorder %s2418_s8, %s2419_s2  ;;  %p2425_p7 = scmp.lt.s32.totalorder %s2423_s1, %s2419_s2 }
  0x84   : > { %1085 = vmatpush.bf16.msra.mxu2 %v1612_v31  ;;  %1073 = vmatmul.bf16.vlgmr.msrb.gmra.mxu3 %v2663_v56  ;;  %v1900_v56 = vor.u32 %v2123_v5, %v1897_v6  ;;  %v1820_v29 = vor.u32 %v2103_v20, %v1817_v21  ;;  %v2069_v31 = vld [vmem:[#allocation5 + $0x114] sm:$0xf]  ;;  %v2134_v6 = vld [vmem:[#allocation8 + $0x8] sm:$0xff] }
  0x85   : > { %1117 = vmatpush.bf16.msra.mxu3 %v1860_v22  ;;  %1047 = vmatmul.bf16.vlgmr.msrb.gmra.mxu1 %v2682_v37  ;;  %v1764_v22 = vor.u32 %v2089_v12, %v1761_v14  ;;  %v1684_v39 = vor.u32 %v2069_v31, %v1681_v32  ;;  %v2137_v5 = vld [vmem:[#allocation8 + $0x20] sm:$0xff]  ;;  %p2421_p3 = pnand %p2420_p1, %p2610_p4  ;;  %p2426_p8 = por %p2425_p7, %p2424_p12 }
  0x86   : > { %1104 = vmatpush.bf16.msra.mxu1 %v1796_v34  ;;  %v1809_v34 = vld [vmem:[#allocation5 + $0x218] sm:$0xf0] }
  0x87   : > { %1092 = vmatpush.bf16.msra.mxu0 %v1724_v38  ;;  %1086 = vmatmul.bf16.vlgmr.msra.gmra.mxu2 %v2667_v1  ;;  %v1697_v1 = vld [vmem:[#allocation5 + $0x138] sm:$0xf0]  ;;  %v2085_v38 = vld [vmem:[#allocation5 + $0x194] sm:$0xf]  ;;  %v1812_v44 = vor.u32 %v2101_v33, %v1809_v34  ;;  %p2422_p5 = pneg %p2421_p3 }
  0x88   : > { %1130 = vmatpush.bf16.msrb.mxu2 %v1924_v35  ;;  %v1700_v13 = vor.u32 %v2073_v8, %v1697_v1  ;;  %v1756_v35 = vor.u32 %v2087_v24, %v1753_v26  ;;  %v2146_v26 = vld [vmem:[#allocation8 + $0x68] sm:$0xff] }
  0x89   : > { %1118 = vmatpush.bf16.msra.mxu3 %v1852_v42  ;;  %v1873_v42 = vld [vmem:[#allocation5 + $0x298] sm:$0xf0]  ;;  %p2427_p9 = pnand %p2426_p8, %p2422_p5 }
  0x8a   : > { %1105 = vmatpush.bf16.msra.mxu1 %v1788_v48  ;;  %v1801_v48 = vld [vmem:[#allocation5 + $0x208] sm:$0xf0]  ;;  %v1876_v50 = vor.u32 %v2117_v41, %v1873_v42  ;;  %v2141_v41 = vld [vmem:[#allocation8 + $0x40] sm:$0xff] }
  0x8b   : > { %1093 = vmatpush.bf16.msra.mxu0 %v1716_v52  ;;  %v1676_v52 = vor.u32 %v2067_v45, %v1673_v46  ;;  %v1804_v55 = vor.u32 %v2099_v47, %v1801_v48 }
  0x8c   : > { %1131 = vmatpush.bf16.msrb.mxu2 %v1916_v49  ;;  %v1748_v49 = vor.u32 %v2085_v38, %v1745_v40  ;;  %v2142_v40 = vld [vmem:[#allocation8 + $0x48] sm:$0xff] }
  0x8d   : > { %1119 = vmatpush.bf16.msra.mxu3 %v1844_v57  ;;  %v2115_v57 = vld [vmem:[#allocation5 + $0x284] sm:$0xf] }
  0x8e   : > { %1106 = vmatpush.bf16.msra.mxu1 %v1780_v62  ;;  %v1868_v62 = vor.u32 %v2115_v57, %v1865_v58 }
  0x8f   : > { %1094 = vmatpush.bf16.msra.mxu0 %v1708_v3  ;;  %v2139_v3 = vld [vmem:[#allocation8 + $0x30] sm:$0xff] }
  0x90   : > { %1132 = vmatpush.bf16.msrb.mxu2 %v1908_v63  ;;  %v1932_v63 = vor.u32 %v2131_v59, %v1929_v60 }
  0x91   : > { %1120 = vmatpush.bf16.msra.mxu3 %v1836_v7 }
  0x92   : > { %1107 = vmatpush.bf16.msra.mxu1 %v1772_v11 }
  0x93   : > { %1095 = vmatpush.bf16.msra.mxu0 %v1700_v13 }
  0x94   : > { %1133 = vmatpush.bf16.msrb.mxu2 %v1900_v56 }
  0x95   : > { %1121 = vmatpush.bf16.msra.mxu3 %v1828_v17  ;;  %v2148_v17 = vld [vmem:[#allocation8 + $0x78] sm:$0xff] }
  0x96   : > { %1108 = vmatpush.bf16.msra.mxu1 %v1764_v22  ;;  %v2147_v22 = vld [vmem:[#allocation8 + $0x70] sm:$0xff] }
  0x97   : > { %1096 = vmatpush.bf16.msra.mxu0 %v1692_v25 }
  0x98   : > { %1134 = vmatpush.bf16.msrb.mxu2 %v1892_v23 }
  0x99   : > { %1122 = vmatpush.bf16.msra.mxu3 %v1820_v29  ;;  %v2145_v29 = vld [vmem:[#allocation8 + $0x60] sm:$0xff] }
  0x9a   : > { %1109 = vmatpush.bf16.msra.mxu1 %v1756_v35  ;;  %v2144_v35 = vld [vmem:[#allocation8 + $0x58] sm:$0xff] }
  0x9b   : > { %1097 = vmatpush.bf16.msra.mxu0 %v1684_v39 }
  0x9c   : > { %1135 = vmatpush.bf16.msrb.mxu2 %v1884_v36  ;;  %v2143_v36 = vld [vmem:[#allocation8 + $0x50] sm:$0xff] }
  0x9d   : > { %1123 = vmatpush.bf16.msra.mxu3 %v1812_v44 }
  0x9e   : > { %1110 = vmatpush.bf16.msra.mxu1 %v1748_v49 }
  0x9f   : > { %1098 = vmatpush.bf16.msra.mxu0 %v1676_v52 }
  0xa0   : > { %1136 = vmatpush.bf16.msrb.mxu2 %v1876_v50 }
  0xa1   : > { %1124 = vmatpush.bf16.msra.mxu3 %v1804_v55 }
  0xa2   : > { %1111 = vmatpush.bf16.msra.mxu1 %v1740_v61  ;;  %1099 = vmatmul.bf16.vlgmr.msra.gmra.mxu0 %v2659_v51  ;;  %v2136_v51 = vld [vmem:[#allocation8 + $0x18] sm:$0xff] }
  0xa4   : > { %1125 = vmatmul.bf16.vlgmr.msra.gmra.mxu3 %v2680_v30  ;;  %1137 = vmatpush.bf16.msrb.mxu2 %v1868_v62  ;;  %v2135_v30 = vld [vmem:[#allocation8 + $0x10] sm:$0xff] }
  0xa5   : > { %1112 = vmatmul.bf16.vlgmr.msra.gmra.mxu1 %v2665_v0  ;;  %1305 = vmatpush.bf16.msrb.mxu3 %v2148_v17 }
  0xa6   : > { %1292 = vmatpush.bf16.msrb.mxu1 %v2140_v2 }
  0xa7   : > { %1138 = vmatmul.bf16.vlgmr.msrb.gmra.mxu2 %v2682_v37  ;;  %v2133_v37 = vld [vmem:[#allocation8] sm:$0xff] }
  0xa8   : > { %1150 = vmatpush.bf16.msra.mxu2 %v1932_v63 }
  0xa9   : > { %1306 = vmatpush.bf16.msrb.mxu3 %v2147_v22 }
  0xaa   : > { %1293 = vmatpush.bf16.msrb.mxu1 %v2139_v3  ;;  %v2156_v3 = vld [vmem:[#allocation10 + $0x38] sm:$0xff] }
  0xab   : > { %1388 = vmatpush.bf16.msrb.mxu0 %v2156_v3 }
  0xad   : > { %1307 = vmatpush.bf16.msrb.mxu3 %v2146_v26 }
  0xae   : > { %1294 = vmatpush.bf16.msrb.mxu1 %v2138_v4  ;;  %v2155_v4 = vld [vmem:[#allocation10 + $0x30] sm:$0xff] }
  0xaf   : > { %1389 = vmatpush.bf16.msrb.mxu0 %v2155_v4 }
  0xb1   : > { %1308 = vmatpush.bf16.msrb.mxu3 %v2145_v29 }
  0xb2   : > { %1295 = vmatpush.bf16.msrb.mxu1 %v2137_v5  ;;  %v2154_v5 = vld [vmem:[#allocation10 + $0x28] sm:$0xff] }
  0xb3   : > { %1390 = vmatpush.bf16.msrb.mxu0 %v2154_v5 }
  0xb5   : > { %1309 = vmatpush.bf16.msrb.mxu3 %v2144_v35 }
  0xb6   : > { %1296 = vmatpush.bf16.msrb.mxu1 %v2136_v51  ;;  %v2153_v51 = vld [vmem:[#allocation10 + $0x20] sm:$0xff] }
  0xb7   : > { %1934 = vmatmul.msk.bf16.vlgmr.msra.gmra.mxu2 %vm970_vm0, %v2674_v43  ;;  %v474_v43 = vld [vmem:[#allocation7] sm:$0x3]  ;;  %1391 = vmatpush.bf16.msrb.mxu0 %v2153_v51 }
  0xb8   : > { %v476_v11 = vperm.slane %v474_v43, 0  ;;  %v477_v45 = vperm.slane %v474_v43, 1  ;;  %v2251_v43 = vld [vmem:[%s2738_s4] ss:$0 sm:$0xff] }
  0xb9   : > { %1310 = vmatpush.bf16.msrb.mxu3 %v2143_v36 }
  0xba   : > { %1297 = vmatpush.bf16.msrb.mxu1 %v2135_v30  ;;  %v2152_v30 = vld [vmem:[#allocation10 + $0x18] sm:$0xff] }
  0xbb   : > { %1392 = vmatpush.bf16.msrb.mxu0 %v2152_v30 }
  0xbd   : > { %1311 = vmatpush.bf16.msrb.mxu3 %v2142_v40 }
  0xbe   : > { %1298 = vmatpush.bf16.msrb.mxu1 %v2134_v6  ;;  %v2151_v6 = vld [vmem:[#allocation10 + $0x10] sm:$0xff] }
  0xbf   : > { %1393 = vmatpush.bf16.msrb.mxu0 %v2151_v6 }
  0xc1   : > { %1312 = vmatpush.bf16.msrb.mxu3 %v2141_v41 }
  0xc2   : > { %1299 = vmatpush.bf16.msrb.mxu1 %v2133_v37  ;;  %v2150_v37 = vld [vmem:[#allocation10 + $0x8] sm:$0xff] }
  0xc3   : > { %1394 = vmatpush.bf16.msrb.mxu0 %v2150_v37 }
  0xdf   : > { %v983_v7 = vpop.f32.mrf.mxu0 }
  0xe0   : > { %v984_v12 = vadd.f32 %v983_v7, %v476_v11 }
  0xe2   : > { %v996_v0 = vpop.f32.mrf.mxu1 }
  0xe3   : > { %v997_v14 = vadd.f32 %v996_v0, %v984_v12 }
  0xe6   : > { %v1009_v8 = vpop.f32.mrf.mxu2 }
  0xe7   : > { %v1022_v1 = vpop.f32.mrf.mxu3  ;;  %v985_v9 = vpop.f32.mrf.mxu0  ;;  %v1010_v16 = vadd.f32 %v1009_v8, %v997_v14  ;;  %v2149_v8 = vld [vmem:[#allocation10] sm:$0xff] }
  0xe8   : > { %1395 = vmatpush.bf16.msrb.mxu0 %v2149_v8 }
  0xe9   : > { %v1023_v18 = vadd.f32 %v1022_v1, %v1010_v16 }
  0xea   : > { %v998_v10 = vpop.f32.mrf.mxu1 }
  0xee   : > { %v1011_v56 = vpop.f32.mrf.mxu2 }
  0xef   : > { %v1024_v13 = vpop.f32.mrf.mxu3 }
  0xf0   : > { %v2252_v13 = vld [vmem:[%s2740_s6] ss:$0 sm:$0xff] }
  0xf6   : > { %v1061_v15 = vpop.f32.mrf.mxu2 }
  0xfe   : > { %v1063_v21 = vpop.f32.mrf.mxu2 }
  0xff   : > { %v1035_v19 = vpop.f32.mrf.mxu0 }
 0x100   : > { %v1036_v20 = vadd.f32 %v1035_v19, %v1023_v18 }
 0x102   : > { %v1048_v23 = vpop.f32.mrf.mxu1 }
 0x103   : > { %v1049_v24 = vadd.f32 %v1048_v23, %v1036_v20 }
 0x105   : > { %v1062_v25 = vadd.f32 %v1061_v15, %v1049_v24 }
 0x107   : > { %v1156_v27 = vmax.f32 %v1062_v25, 0.0  ;;  %v1037_v28 = vpop.f32.mrf.mxu0  ;;  %v1074_v33 = vpop.f32.mrf.mxu3 }
 0x108   : > { %v1075_v48 = vadd.f32 %v1074_v33, %v477_v45 }
 0x109   : > { %v1158_v31 = vpack.c.bf16 %v1156_v27, %v1156_v27 }
 0x10a   : > { %v1087_v32 = vpop.f32.mrf.mxu2  ;;  %v1050_v34 = vpop.f32.mrf.mxu1 }
 0x10b   : > { %1300 = vmatmul.bf16.vlgmr.msrb.gmra.mxu1 %v1158_v31  ;;  %v1088_v52 = vadd.f32 %v1087_v32, %v1075_v48 }
 0x10f   : > { %v1076_v39 = vpop.f32.mrf.mxu3 }
 0x112   : > { %v1089_v38 = vpop.f32.mrf.mxu2 }
 0x11f   : > { %v1100_v42 = vpop.f32.mrf.mxu0 }
 0x120   : > { %v1101_v53 = vadd.f32 %v1100_v42, %v1088_v52 }
 0x122   : > { %v1113_v44 = vpop.f32.mrf.mxu1 }
 0x123   : > { %v1114_v57 = vadd.f32 %v1113_v44, %v1101_v53 }
 0x127   : > { %v1126_v46 = vpop.f32.mrf.mxu3  ;;  %v1102_v47 = vpop.f32.mrf.mxu0 }
 0x128   : > { %v1127_v58 = vadd.f32 %v1126_v46, %v1114_v57 }
 0x12a   : > { %v1139_v49 = vpop.f32.mrf.mxu2  ;;  %v1115_v50 = vpop.f32.mrf.mxu1 }
 0x12b   : > { %v1140_v59 = vadd.f32 %v1139_v49, %v1127_v58 }
 0x12f   : > { %v1128_v54 = vpop.f32.mrf.mxu3 }
 0x132   : > { %v1141_v55 = vpop.f32.mrf.mxu2 }
 0x13a   : > { %v1152_v60 = vpop.f32.mrf.mxu2 }
 0x13b   : > { %v1153_v61 = vadd.f32 %v1152_v60, %v1140_v59 }
 0x13d   : > { %v1157_v62 = vmax.f32 %v1153_v61, 0.0 }
 0x13f   : > { %v1159_v63 = vpack.c.bf16 %v1157_v62, %v1157_v62 }
 0x141   : > { %1313 = vmatmul.bf16.vlgmr.msrb.gmra.mxu3 %v1159_v63 }
 0x142   : > { %v1154_v2 = vpop.f32.mrf.mxu2 }
 0x188   : > { %v1301_v7 = vpop.f32.mrf.mxu1 }
 0x189   : > { %v1302_v1 = vadd.f32 %v2251_v43, %v1301_v7 }
 0x190   : > { %v1303_v0 = vpop.f32.mrf.mxu1 }
 0x1c4   : > { %v1314_v9 = vpop.f32.mrf.mxu3 }
 0x1c5   : > { %v1315_v10 = vadd.f32 %v1314_v9, %v1302_v1 }
 0x1c7   : > { %v1318_v11 = vmax.f32 %v1315_v10, 0.0 }
 0x1c9   : > { %v1319_v56 = vpack.c.bf16 %v1318_v11, %v1318_v11 }
 0x1cb   : > { %1396 = vmatmul.bf16.vlgmr.msrb.gmra.mxu0 %v1319_v56 }
 0x1cc   : > { %v1316_v12 = vpop.f32.mrf.mxu3 }
 0x248   : > { %v1397_v14 = vpop.f32.mrf.mxu0 }
 0x249   : > { %v1398_v15 = vadd.f32 %v2252_v13, %v1397_v14 }
 0x24b   : > { %v1401_v16 = vpack.c.bf16 %v1398_v15, %v1398_v15 }
 0x24d   : > { %1402 = vst [vmem:[%s360_s19] sm:$0xf] %v1401_v16 }
 0x24e   : > { %2430 = shalt.err (!%p2427_p9)
}
 0x24f   : > { %2178 = dma.vmem_to_hbm [thread:$0]  (%p2610_p4), %s1417_s10, 64, %s1419_s11, %s1404_s29  }
 0x250   : > { %v1399_v17 = vpop.f32.mrf.mxu0 }
 0x251 PF: > { %s1430_s15 = sand.u32 1, %s2465_s24   ;;  %p2754_p10 = scmp.ge.s32.totalorder %s2477_s27, 2 }
 0x252   : > { %s1431_s30 = scalar_lea.sflag [#allocation4], %s1430_s15 }
 0x253   : > { %p2198_p11 = pnand %p2754_p10, %p2614_p6 }
 0x255   : > { %p2199_p13 = pneg %p2198_p11 }
 0x257   : > { %2460 = dma.done.wait (%p2199_p13), %s1431_s30, 64  }
 0x258   : > { %2462 = vsyncadd (%p2199_p13), %s1431_s30, 4294967232  ;;  %p22_p0 = scmp.ge.s32.totalorder %s2588_s17, 4   ;;  %s2755_s24 = smov %s2469_s25 }
 0x259   : > { %s2756_s25 = smov %s2473_s26  ;;  %s2757_s26 = smov %s2599_s22 }
 0x25a   : > { %s2758_s27 = smov %s2588_s17  ;;  %24 = sbr.rel (!%p22_p0) target bundleno = 11 (0xb), region = 109 }
 0x25f   :  { %1437 = vsyncpa [#allocation3], 1 }
 0x260   :  { %1439 = vsyncpa [#allocation3 + $0x1], 1 }
 0x261   :  { %1440 = vsyncpa [#allocation6], 1 }
 0x262   :  { %1441 = vsyncpa [#allocation9], 1 }
 0x263   :  { %1442 = vsyncpa [#allocation4], 1 }
 0x264   :  { %1444 = vsyncpa [#allocation4 + $0x1], 1 }

</bundles_post_ra>
